<compile_context>
chip_gen: v5e
topology: v5e:2x2
jax: 0.10.0
libtpu: 0.0.40
codegen_flags: <defaults>
</compile_context>

<pallas_src>
import functools

import jax
import jax.numpy as jnp
import numpy as np
from jax import lax
from jax.experimental import pallas as pl
from jax.experimental.pallas import tpu as pltpu

EXPANSION = 4


# ----------------------------------------------------------------------------
# Fused Bottleneck kernel: one grid step == one image.
# ----------------------------------------------------------------------------
def _bottleneck_kernel(x_ref, w1_ref, b1_ref, w2_ref, b2_ref, w3_ref, b3_ref,
                       *rest, s, Ho, Wo, Cin, P, C4, has_proj, compute_dtype):
    if has_proj:
        wsc_ref, bsc_ref, o_ref, h1_pad = rest
    else:
        o_ref, h1_pad = rest
    f32 = jnp.float32

    # --- stage 1: conv1 (1x1) + bn1 + relu, per spatial phase, written into the
    #     zero-padded parity-decomposed scratch that represents pad(h1, 1).
    h1_pad[...] = jnp.zeros(h1_pad.shape, h1_pad.dtype)
    for r in range(s):
        for c in range(s):
            xp = x_ref[0, r, c]                                  # (Ho, Wo, Cin)
            h = jnp.dot(xp.reshape(Ho * Wo, Cin), w1_ref[...],
                        preferred_element_type=f32)
            h = jnp.maximum(h + b1_ref[...], 0.0)
            pr, orow = (r + 1) % s, (r + 1) // s                 # parity plane / offset of
            pc, ocol = (c + 1) % s, (c + 1) // s                 # this phase inside pad(h1)
            h1_pad[pr, pc, orow:orow + Ho, ocol:ocol + Wo, :] = (
                h.astype(h1_pad.dtype).reshape(Ho, Wo, P))

    # --- stage 2: conv2 (3x3, stride s) + bn2 + relu (only strided outputs computed)
    # TODO(synk): im2col (single wide-K matmul) would fill the MXU better at small Cin;
    # kept as 9 per-tap dots because in-kernel minor-dim concatenation forces relayouts.
    acc = jnp.zeros((Ho * Wo, P), f32)
    for ky in range(3):
        for kx in range(3):
            slab = h1_pad[ky % s, kx % s,
                          ky // s: ky // s + Ho,
                          kx // s: kx // s + Wo, :]               # contiguous tap slice
            acc = acc + jnp.dot(slab.reshape(Ho * Wo, P), w2_ref[ky * 3 + kx],
                                preferred_element_type=f32)
    h2 = jnp.maximum(acc + b2_ref[...], 0.0).astype(compute_dtype)

    # --- stage 3: conv3 (1x1) + bn3 + shortcut + relu
    y = jnp.dot(h2, w3_ref[...], preferred_element_type=f32) + b3_ref[...]
    xs = x_ref[0, 0, 0].reshape(Ho * Wo, Cin)    # phase (0,0) == x[::s, ::s] (shortcut)
    if has_proj:
        y = y + jnp.dot(xs, wsc_ref[...], preferred_element_type=f32) + bsc_ref[...]
    else:
        y = y + xs.astype(f32)
    o_ref[0] = jnp.maximum(y, 0.0).reshape(Ho, Wo, C4)


# ----------------------------------------------------------------------------
# Parameter init (deterministic, folded-BN inference form)
# ----------------------------------------------------------------------------
def init_bottleneck_params(key, in_planes, planes, stride):
    out_planes = EXPANSION * planes
    eps = 1e-5
    ks = jax.random.split(key, 8)

    def conv_w(k, kh, kw, cin, cout):
        return 0.1 * jax.random.normal(k, (kh, kw, cin, cout), jnp.float32)

    def bn(k, c):
        k1, k2, k3, k4 = jax.random.split(k, 4)
        gamma = 1.0 + 0.1 * jax.random.normal(k1, (c,), jnp.float32)
        beta = 0.1 * jax.random.normal(k2, (c,), jnp.float32)
        mean = 0.1 * jax.random.normal(k3, (c,), jnp.float32)
        var = 0.5 + jnp.abs(jax.random.normal(k4, (c,), jnp.float32))
        scale = gamma / jnp.sqrt(var + eps)
        bias = beta - mean * scale
        return scale, bias

    p = {}
    p["w1"] = conv_w(ks[0], 1, 1, in_planes, planes)
    p["s1"], p["b1"] = bn(ks[1], planes)
    p["w2"] = conv_w(ks[2], 3, 3, planes, planes)
    p["s2"], p["b2"] = bn(ks[3], planes)
    p["w3"] = conv_w(ks[4], 1, 1, planes, out_planes)
    p["s3"], p["b3"] = bn(ks[5], out_planes)
    if stride != 1 or in_planes != out_planes:
        p["wsc"] = conv_w(ks[6], 1, 1, in_planes, out_planes)
        p["ssc"], p["bsc"] = bn(ks[7], out_planes)
    return p


# ----------------------------------------------------------------------------
# Bottleneck forward (Pallas)
# ----------------------------------------------------------------------------
def bottleneck_forward(x_nchw, params, stride, compute_dtype=jnp.float32):
    N, Cin, H, W = x_nchw.shape
    s = int(stride)
    assert s in (1, 2), "CIFAR ResNet Bottleneck uses stride 1 or 2"
    assert H % s == 0 and W % s == 0, "stride-2 phase split requires even spatial dims"
    Ho, Wo = H // s, W // s
    P = params["w1"].shape[-1]
    C4 = params["w3"].shape[-1]
    has_proj = "wsc" in params
    if not has_proj:
        assert s == 1 and Cin == C4, "identity shortcut requires stride 1 and Cin == 4*planes"

    # NCHW -> (N, s, s, H/s, W/s, Cin): channels-last + space-to-depth phase split in a
    # single XLA transpose.  Phase (r, c) == x[:, :, r::s, c::s] (NHWC); phase (0, 0)
    # doubles as the strided shortcut input (no separate gather pass).
    xph = x_nchw.reshape(N, Cin, Ho, s, Wo, s).transpose(0, 3, 5, 2, 4, 1)
    xph = xph.astype(compute_dtype)

    # Fold BN scale into conv weights (per output channel) -> epilogue is just +bias.
    def fold(w, scale):
        return (w * scale).astype(compute_dtype)

    w1 = fold(params["w1"].reshape(Cin, P), params["s1"])
    w2 = fold(params["w2"], params["s2"]).reshape(9, P, P)
    w3 = fold(params["w3"].reshape(P, C4), params["s3"])
    b1 = params["b1"].reshape(1, P).astype(jnp.float32)
    b2 = params["b2"].reshape(1, P).astype(jnp.float32)
    b3 = params["b3"].reshape(1, C4).astype(jnp.float32)

    inputs = [xph, w1, b1, w2, b2, w3, b3]
    in_specs = [
        pl.BlockSpec((1, s, s, Ho, Wo, Cin), lambda n: (n, 0, 0, 0, 0, 0)),
        pl.BlockSpec((Cin, P), lambda n: (0, 0)),
        pl.BlockSpec((1, P), lambda n: (0, 0)),
        pl.BlockSpec((9, P, P), lambda n: (0, 0, 0)),
        pl.BlockSpec((1, P), lambda n: (0, 0)),
        pl.BlockSpec((P, C4), lambda n: (0, 0)),
        pl.BlockSpec((1, C4), lambda n: (0, 0)),
    ]
    if has_proj:
        wsc = fold(params["wsc"].reshape(Cin, C4), params["ssc"])
        bsc = params["bsc"].reshape(1, C4).astype(jnp.float32)
        inputs += [wsc, bsc]
        in_specs += [pl.BlockSpec((Cin, C4), lambda n: (0, 0)),
                     pl.BlockSpec((1, C4), lambda n: (0, 0))]

    # Parity-decomposed pad(h1, 1) scratch: (row parity, col parity, rows, cols, P).
    Hb = (H + 2 + s - 1) // s
    Wb = (W + 2 + s - 1) // s

    # Explicit VMEM budget (double-buffered activations + resident weights + scratch),
    # clamped so it stays safe on v7x's 64 MiB parts.
    item = np.dtype(compute_dtype).itemsize
    act_bytes = 2 * (H * W * Cin * item + Ho * Wo * C4 * 4)
    w_bytes = sum(int(np.prod(a.shape)) * a.dtype.itemsize for a in inputs[1:])
    scratch_bytes = s * s * Hb * Wb * P * item
    vmem_limit = int(min(max(4 * (act_bytes + w_bytes + scratch_bytes), 16 * 2 ** 20),
                         48 * 2 ** 20))

    kernel = functools.partial(
        _bottleneck_kernel, s=s, Ho=Ho, Wo=Wo, Cin=Cin, P=P, C4=C4,
        has_proj=has_proj, compute_dtype=compute_dtype)

    # TODO(synk): for large spatial sizes, add a second (row-tile) grid axis with a
    # 1-row halo so the per-step VMEM footprint stays bounded.
    out = pl.pallas_call(
        kernel,
        out_shape=jax.ShapeDtypeStruct((N, Ho, Wo, C4), jnp.float32),
        grid=(N,),
        in_specs=in_specs,
        out_specs=pl.BlockSpec((1, Ho, Wo, C4), lambda n: (n, 0, 0, 0)),
        scratch_shapes=[pltpu.VMEM((s, s, Hb, Wb, P), compute_dtype)],
        compiler_params=pltpu.CompilerParams(
            dimension_semantics=("parallel",),   # batch shards across v7x's 2 TCs
            vmem_limit_bytes=vmem_limit),
    )(*inputs)

    return jnp.transpose(out, (0, 3, 1, 2))  # NHWC -> NCHW


# ----------------------------------------------------------------------------
# Pure-JAX reference (for correctness check)
# ----------------------------------------------------------------------------
def bottleneck_reference(x_nchw, params, stride):
    x = jnp.transpose(x_nchw, (0, 2, 3, 1)).astype(jnp.float32)
    dn = ("NHWC", "HWIO", "NHWC")

    def conv(a, w, s, pad):
        return lax.conv_general_dilated(a, w, (s, s), pad, dimension_numbers=dn)

    h = jax.nn.relu(conv(x, params["w1"], 1, "VALID") * params["s1"] + params["b1"])
    h = jax.nn.relu(conv(h, params["w2"], stride, [(1, 1), (1, 1)]) * params["s2"] + params["b2"])
    h = conv(h, params["w3"], 1, "VALID") * params["s3"] + params["b3"]
    if "wsc" in params:
        sc = conv(x, params["wsc"], stride, "VALID") * params["ssc"] + params["bsc"]
    else:
        sc = x
    out = jax.nn.relu(h + sc)
    return jnp.transpose(out, (0, 3, 1, 2))


if __name__ == "__main__":
    root = jax.random.PRNGKey(0)

    configs = [
        # (in_planes, planes, spatial, stride)
        (16, 8, 8, 2),    # strided block with projection shortcut
        (32, 8, 8, 1),    # identity-shortcut block (in_planes == 4 * planes)
    ]
    for idx, (cin, planes, spatial, stride) in enumerate(configs):
        k_x, k_p = jax.random.split(jax.random.fold_in(root, idx))
        x = jax.random.normal(k_x, (2, cin, spatial, spatial), jnp.float32)  # NCHW
        params = init_bottleneck_params(k_p, cin, planes, stride)

        out = jax.block_until_ready(bottleneck_forward(x, params, stride))
        ref = jax.block_until_ready(bottleneck_reference(x, params, stride))
        np.testing.assert_allclose(np.asarray(out), np.asarray(ref),
                                   rtol=1e-3, atol=1e-3)

    # bf16 MXU path (halved HBM/VMEM traffic, f32 accumulation); loose tolerance check.
    cin, planes, spatial, stride = configs[0]
    k_x, k_p = jax.random.split(jax.random.fold_in(root, 0))
    x = jax.random.normal(k_x, (2, cin, spatial, spatial), jnp.float32)
    params = init_bottleneck_params(k_p, cin, planes, stride)
    out_bf16 = jax.block_until_ready(
        bottleneck_forward(x, params, stride, compute_dtype=jnp.bfloat16))
    ref = jax.block_until_ready(bottleneck_reference(x, params, stride))
    np.testing.assert_allclose(np.asarray(out_bf16), np.asarray(ref),
                               rtol=1e-1, atol=1e-1)

    print("KERNEL_OK")
</pallas_src>

<mosaic_0001>
module attributes {stable_mosaic.version = 11 : i64} {
  func.func @_bottleneck_kernel(%arg0: i32, %arg1: memref<1x2x2x4x4x16xf32, #tpu.memory_space<vmem>>, %arg2: memref<16x8xf32, #tpu.memory_space<vmem>>, %arg3: memref<1x8xf32, #tpu.memory_space<vmem>>, %arg4: memref<9x8x8xf32, #tpu.memory_space<vmem>>, %arg5: memref<1x8xf32, #tpu.memory_space<vmem>>, %arg6: memref<8x32xf32, #tpu.memory_space<vmem>>, %arg7: memref<1x32xf32, #tpu.memory_space<vmem>>, %arg8: memref<16x32xf32, #tpu.memory_space<vmem>>, %arg9: memref<1x32xf32, #tpu.memory_space<vmem>>, %arg10: memref<1x4x4x32xf32, #tpu.memory_space<vmem>>, %arg11: memref<2x2x5x5x8xf32, #tpu.memory_space<vmem>>) attributes {dimension_semantics = [#tpu.dimension_semantics<parallel>], iteration_bounds = array<i64: 2>, scalar_prefetch = 0 : i64, scratch_operands = 1 : i64, tpu.core_type = #tpu.core_type<tc>, window_params = [{transform_indices = @transform_0, window_bounds = array<i64: 1, 2, 2, 4, 4, 16>}, {pipeline_mode = #tpu.pipeline_mode<synchronous>, transform_indices = @transform_1, window_bounds = array<i64: 16, 8>}, {pipeline_mode = #tpu.pipeline_mode<synchronous>, transform_indices = @transform_2, window_bounds = array<i64: 1, 8>}, {pipeline_mode = #tpu.pipeline_mode<synchronous>, transform_indices = @transform_3, window_bounds = array<i64: 9, 8, 8>}, {pipeline_mode = #tpu.pipeline_mode<synchronous>, transform_indices = @transform_4, window_bounds = array<i64: 1, 8>}, {pipeline_mode = #tpu.pipeline_mode<synchronous>, transform_indices = @transform_5, window_bounds = array<i64: 8, 32>}, {pipeline_mode = #tpu.pipeline_mode<synchronous>, transform_indices = @transform_6, window_bounds = array<i64: 1, 32>}, {pipeline_mode = #tpu.pipeline_mode<synchronous>, transform_indices = @transform_7, window_bounds = array<i64: 16, 32>}, {pipeline_mode = #tpu.pipeline_mode<synchronous>, transform_indices = @transform_8, window_bounds = array<i64: 1, 32>}, {transform_indices = @transform_9, window_bounds = array<i64: 1, 4, 4, 32>}]} {
    %cst = arith.constant 0.000000e+00 : f32
    %0 = vector.broadcast %cst : f32 to vector<2x2x5x5x8xf32>
    %c0 = arith.constant 0 : index
    %c0_0 = arith.constant 0 : index
    %c0_1 = arith.constant 0 : index
    %c0_2 = arith.constant 0 : index
    %c0_3 = arith.constant 0 : index
    %1 = vector.load %arg11[%c0, %c0_0, %c0_1, %c0_2, %c0_3] : memref<2x2x5x5x8xf32, #tpu.memory_space<vmem>>, vector<2x2x5x5x8xf32>
    tpu.vector_store %arg11[%c0, %c0_0, %c0_1, %c0_2, %c0_3], %0 {strides = array<i32>} : memref<2x2x5x5x8xf32, #tpu.memory_space<vmem>>, vector<2x2x5x5x8xf32>,
    %c0_4 = arith.constant 0 : index
    %c0_5 = arith.constant 0 : index
    %c0_6 = arith.constant 0 : index
    %c0_7 = arith.constant 0 : index
    %c0_8 = arith.constant 0 : index
    %c0_9 = arith.constant 0 : index
    %2 = vector.load %arg1[%c0_4, %c0_5, %c0_6, %c0_7, %c0_8, %c0_9] : memref<1x2x2x4x4x16xf32, #tpu.memory_space<vmem>>, vector<1x1x1x4x4x16xf32>
    %3 = vector.shape_cast %2 : vector<1x1x1x4x4x16xf32> to vector<4x4x16xf32>
    %4 = vector.shape_cast %3 : vector<4x4x16xf32> to vector<16x16xf32>
    %c0_10 = arith.constant 0 : index
    %c0_11 = arith.constant 0 : index
    %5 = vector.load %arg2[%c0_10, %c0_11] : memref<16x8xf32, #tpu.memory_space<vmem>>, vector<16x8xf32>
    %cst_12 = arith.constant dense<0.000000e+00> : vector<16x8xf32>
    %6 = tpu.matmul %4, %5, %cst_12 {dimension_numbers = #tpu.dot_dimension_numbers<[1], [0], [0], [1], [0, 0, 1, 1], [], []>} : vector<16x16xf32>, vector<16x8xf32>, vector<16x8xf32> -> vector<16x8xf32>
    %c0_13 = arith.constant 0 : index
    %c0_14 = arith.constant 0 : index
    %7 = vector.load %arg3[%c0_13, %c0_14] : memref<1x8xf32, #tpu.memory_space<vmem>>, vector<1x8xf32>
    %8 = vector.broadcast %7 : vector<1x8xf32> to vector<16x8xf32>
    %9 = arith.addf %6, %8 : vector<16x8xf32>
    %cst_15 = arith.constant 0.000000e+00 : f32
    %10 = vector.broadcast %cst_15 : f32 to vector<16x8xf32>
    %11 = arith.maximumf %9, %10 : vector<16x8xf32>
    %12 = vector.shape_cast %11 : vector<16x8xf32> to vector<4x4x8xf32>
    %c1 = arith.constant 1 : index
    %c1_16 = arith.constant 1 : index
    %c0_17 = arith.constant 0 : index
    %c0_18 = arith.constant 0 : index
    %c0_19 = arith.constant 0 : index
    %13 = vector.load %arg11[%c1, %c1_16, %c0_17, %c0_18, %c0_19] : memref<2x2x5x5x8xf32, #tpu.memory_space<vmem>>, vector<1x1x4x4x8xf32>
    %14 = vector.shape_cast %13 : vector<1x1x4x4x8xf32> to vector<4x4x8xf32>
    %15 = vector.shape_cast %12 : vector<4x4x8xf32> to vector<1x1x4x4x8xf32>
    tpu.vector_store %arg11[%c1, %c1_16, %c0_17, %c0_18, %c0_19], %15 {strides = array<i32>} : memref<2x2x5x5x8xf32, #tpu.memory_space<vmem>>, vector<1x1x4x4x8xf32>,
    %c0_20 = arith.constant 0 : index
    %c0_21 = arith.constant 0 : index
    %c1_22 = arith.constant 1 : index
    %c0_23 = arith.constant 0 : index
    %c0_24 = arith.constant 0 : index
    %c0_25 = arith.constant 0 : index
    %16 = vector.load %arg1[%c0_20, %c0_21, %c1_22, %c0_23, %c0_24, %c0_25] : memref<1x2x2x4x4x16xf32, #tpu.memory_space<vmem>>, vector<1x1x1x4x4x16xf32>
    %17 = vector.shape_cast %16 : vector<1x1x1x4x4x16xf32> to vector<4x4x16xf32>
    %18 = vector.shape_cast %17 : vector<4x4x16xf32> to vector<16x16xf32>
    %c0_26 = arith.constant 0 : index
    %c0_27 = arith.constant 0 : index
    %19 = vector.load %arg2[%c0_26, %c0_27] : memref<16x8xf32, #tpu.memory_space<vmem>>, vector<16x8xf32>
    %cst_28 = arith.constant dense<0.000000e+00> : vector<16x8xf32>
    %20 = tpu.matmul %18, %19, %cst_28 {dimension_numbers = #tpu.dot_dimension_numbers<[1], [0], [0], [1], [0, 0, 1, 1], [], []>} : vector<16x16xf32>, vector<16x8xf32>, vector<16x8xf32> -> vector<16x8xf32>
    %c0_29 = arith.constant 0 : index
    %c0_30 = arith.constant 0 : index
    %21 = vector.load %arg3[%c0_29, %c0_30] : memref<1x8xf32, #tpu.memory_space<vmem>>, vector<1x8xf32>
    %22 = vector.broadcast %21 : vector<1x8xf32> to vector<16x8xf32>
    %23 = arith.addf %20, %22 : vector<16x8xf32>
    %cst_31 = arith.constant 0.000000e+00 : f32
    %24 = vector.broadcast %cst_31 : f32 to vector<16x8xf32>
    %25 = arith.maximumf %23, %24 : vector<16x8xf32>
    %26 = vector.shape_cast %25 : vector<16x8xf32> to vector<4x4x8xf32>
    %c1_32 = arith.constant 1 : index
    %c0_33 = arith.constant 0 : index
    %c0_34 = arith.constant 0 : index
    %c1_35 = arith.constant 1 : index
    %c0_36 = arith.constant 0 : index
    %27 = vector.load %arg11[%c1_32, %c0_33, %c0_34, %c1_35, %c0_36] : memref<2x2x5x5x8xf32, #tpu.memory_space<vmem>>, vector<1x1x4x4x8xf32>
    %28 = vector.shape_cast %27 : vector<1x1x4x4x8xf32> to vector<4x4x8xf32>
    %29 = vector.shape_cast %26 : vector<4x4x8xf32> to vector<1x1x4x4x8xf32>
    tpu.vector_store %arg11[%c1_32, %c0_33, %c0_34, %c1_35, %c0_36], %29 {strides = array<i32>} : memref<2x2x5x5x8xf32, #tpu.memory_space<vmem>>, vector<1x1x4x4x8xf32>,
    %c0_37 = arith.constant 0 : index
    %c1_38 = arith.constant 1 : index
    %c0_39 = arith.constant 0 : index
    %c0_40 = arith.constant 0 : index
    %c0_41 = arith.constant 0 : index
    %c0_42 = arith.constant 0 : index
    %30 = vector.load %arg1[%c0_37, %c1_38, %c0_39, %c0_40, %c0_41, %c0_42] : memref<1x2x2x4x4x16xf32, #tpu.memory_space<vmem>>, vector<1x1x1x4x4x16xf32>
    %31 = vector.shape_cast %30 : vector<1x1x1x4x4x16xf32> to vector<4x4x16xf32>
    %32 = vector.shape_cast %31 : vector<4x4x16xf32> to vector<16x16xf32>
    %c0_43 = arith.constant 0 : index
    %c0_44 = arith.constant 0 : index
    %33 = vector.load %arg2[%c0_43, %c0_44] : memref<16x8xf32, #tpu.memory_space<vmem>>, vector<16x8xf32>
    %cst_45 = arith.constant dense<0.000000e+00> : vector<16x8xf32>
    %34 = tpu.matmul %32, %33, %cst_45 {dimension_numbers = #tpu.dot_dimension_numbers<[1], [0], [0], [1], [0, 0, 1, 1], [], []>} : vector<16x16xf32>, vector<16x8xf32>, vector<16x8xf32> -> vector<16x8xf32>
    %c0_46 = arith.constant 0 : index
    %c0_47 = arith.constant 0 : index
    %35 = vector.load %arg3[%c0_46, %c0_47] : memref<1x8xf32, #tpu.memory_space<vmem>>, vector<1x8xf32>
    %36 = vector.broadcast %35 : vector<1x8xf32> to vector<16x8xf32>
    %37 = arith.addf %34, %36 : vector<16x8xf32>
    %cst_48 = arith.constant 0.000000e+00 : f32
    %38 = vector.broadcast %cst_48 : f32 to vector<16x8xf32>
    %39 = arith.maximumf %37, %38 : vector<16x8xf32>
    %40 = vector.shape_cast %39 : vector<16x8xf32> to vector<4x4x8xf32>
    %c0_49 = arith.constant 0 : index
    %c1_50 = arith.constant 1 : index
    %c1_51 = arith.constant 1 : index
    %c0_52 = arith.constant 0 : index
    %c0_53 = arith.constant 0 : index
    %41 = vector.load %arg11[%c0_49, %c1_50, %c1_51, %c0_52, %c0_53] : memref<2x2x5x5x8xf32, #tpu.memory_space<vmem>>, vector<1x1x4x4x8xf32>
    %42 = vector.shape_cast %41 : vector<1x1x4x4x8xf32> to vector<4x4x8xf32>
    %43 = vector.shape_cast %40 : vector<4x4x8xf32> to vector<1x1x4x4x8xf32>
    tpu.vector_store %arg11[%c0_49, %c1_50, %c1_51, %c0_52, %c0_53], %43 {strides = array<i32>} : memref<2x2x5x5x8xf32, #tpu.memory_space<vmem>>, vector<1x1x4x4x8xf32>,
    %c0_54 = arith.constant 0 : index
    %c1_55 = arith.constant 1 : index
    %c1_56 = arith.constant 1 : index
    %c0_57 = arith.constant 0 : index
    %c0_58 = arith.constant 0 : index
    %c0_59 = arith.constant 0 : index
    %44 = vector.load %arg1[%c0_54, %c1_55, %c1_56, %c0_57, %c0_58, %c0_59] : memref<1x2x2x4x4x16xf32, #tpu.memory_space<vmem>>, vector<1x1x1x4x4x16xf32>
    %45 = vector.shape_cast %44 : vector<1x1x1x4x4x16xf32> to vector<4x4x16xf32>
    %46 = vector.shape_cast %45 : vector<4x4x16xf32> to vector<16x16xf32>
    %c0_60 = arith.constant 0 : index
    %c0_61 = arith.constant 0 : index
    %47 = vector.load %arg2[%c0_60, %c0_61] : memref<16x8xf32, #tpu.memory_space<vmem>>, vector<16x8xf32>
    %cst_62 = arith.constant dense<0.000000e+00> : vector<16x8xf32>
    %48 = tpu.matmul %46, %47, %cst_62 {dimension_numbers = #tpu.dot_dimension_numbers<[1], [0], [0], [1], [0, 0, 1, 1], [], []>} : vector<16x16xf32>, vector<16x8xf32>, vector<16x8xf32> -> vector<16x8xf32>
    %c0_63 = arith.constant 0 : index
    %c0_64 = arith.constant 0 : index
    %49 = vector.load %arg3[%c0_63, %c0_64] : memref<1x8xf32, #tpu.memory_space<vmem>>, vector<1x8xf32>
    %50 = vector.broadcast %49 : vector<1x8xf32> to vector<16x8xf32>
    %51 = arith.addf %48, %50 : vector<16x8xf32>
    %cst_65 = arith.constant 0.000000e+00 : f32
    %52 = vector.broadcast %cst_65 : f32 to vector<16x8xf32>
    %53 = arith.maximumf %51, %52 : vector<16x8xf32>
    %54 = vector.shape_cast %53 : vector<16x8xf32> to vector<4x4x8xf32>
    %c0_66 = arith.constant 0 : index
    %c0_67 = arith.constant 0 : index
    %c1_68 = arith.constant 1 : index
    %c1_69 = arith.constant 1 : index
    %c0_70 = arith.constant 0 : index
    %55 = vector.load %arg11[%c0_66, %c0_67, %c1_68, %c1_69, %c0_70] : memref<2x2x5x5x8xf32, #tpu.memory_space<vmem>>, vector<1x1x4x4x8xf32>
    %56 = vector.shape_cast %55 : vector<1x1x4x4x8xf32> to vector<4x4x8xf32>
    %57 = vector.shape_cast %54 : vector<4x4x8xf32> to vector<1x1x4x4x8xf32>
    tpu.vector_store %arg11[%c0_66, %c0_67, %c1_68, %c1_69, %c0_70], %57 {strides = array<i32>} : memref<2x2x5x5x8xf32, #tpu.memory_space<vmem>>, vector<1x1x4x4x8xf32>,
    %cst_71 = arith.constant 0.000000e+00 : f32
    %58 = vector.broadcast %cst_71 : f32 to vector<16x8xf32>
    %c0_72 = arith.constant 0 : index
    %c0_73 = arith.constant 0 : index
    %c0_74 = arith.constant 0 : index
    %c0_75 = arith.constant 0 : index
    %c0_76 = arith.constant 0 : index
    %59 = vector.load %arg11[%c0_72, %c0_73, %c0_74, %c0_75, %c0_76] : memref<2x2x5x5x8xf32, #tpu.memory_space<vmem>>, vector<1x1x4x4x8xf32>
    %60 = vector.shape_cast %59 : vector<1x1x4x4x8xf32> to vector<4x4x8xf32>
    %61 = vector.shape_cast %60 : vector<4x4x8xf32> to vector<16x8xf32>
    %c0_77 = arith.constant 0 : index
    %c0_78 = arith.constant 0 : index
    %c0_79 = arith.constant 0 : index
    %62 = vector.load %arg4[%c0_77, %c0_78, %c0_79] : memref<9x8x8xf32, #tpu.memory_space<vmem>>, vector<1x8x8xf32>
    %63 = vector.shape_cast %62 : vector<1x8x8xf32> to vector<8x8xf32>
    %cst_80 = arith.constant dense<0.000000e+00> : vector<16x8xf32>
    %64 = tpu.matmul %61, %63, %cst_80 {dimension_numbers = #tpu.dot_dimension_numbers<[1], [0], [0], [1], [0, 0, 1, 1], [], []>} : vector<16x8xf32>, vector<8x8xf32>, vector<16x8xf32> -> vector<16x8xf32>
    %65 = arith.addf %58, %64 : vector<16x8xf32>
    %c0_81 = arith.constant 0 : index
    %c1_82 = arith.constant 1 : index
    %c0_83 = arith.constant 0 : index
    %c0_84 = arith.constant 0 : index
    %c0_85 = arith.constant 0 : index
    %66 = vector.load %arg11[%c0_81, %c1_82, %c0_83, %c0_84, %c0_85] : memref<2x2x5x5x8xf32, #tpu.memory_space<vmem>>, vector<1x1x4x4x8xf32>
    %67 = vector.shape_cast %66 : vector<1x1x4x4x8xf32> to vector<4x4x8xf32>
    %68 = vector.shape_cast %67 : vector<4x4x8xf32> to vector<16x8xf32>
    %c1_86 = arith.constant 1 : index
    %c0_87 = arith.constant 0 : index
    %c0_88 = arith.constant 0 : index
    %69 = vector.load %arg4[%c1_86, %c0_87, %c0_88] : memref<9x8x8xf32, #tpu.memory_space<vmem>>, vector<1x8x8xf32>
    %70 = vector.shape_cast %69 : vector<1x8x8xf32> to vector<8x8xf32>
    %cst_89 = arith.constant dense<0.000000e+00> : vector<16x8xf32>
    %71 = tpu.matmul %68, %70, %cst_89 {dimension_numbers = #tpu.dot_dimension_numbers<[1], [0], [0], [1], [0, 0, 1, 1], [], []>} : vector<16x8xf32>, vector<8x8xf32>, vector<16x8xf32> -> vector<16x8xf32>
    %72 = arith.addf %65, %71 : vector<16x8xf32>
    %c0_90 = arith.constant 0 : index
    %c0_91 = arith.constant 0 : index
    %c0_92 = arith.constant 0 : index
    %c1_93 = arith.constant 1 : index
    %c0_94 = arith.constant 0 : index
    %73 = vector.load %arg11[%c0_90, %c0_91, %c0_92, %c1_93, %c0_94] : memref<2x2x5x5x8xf32, #tpu.memory_space<vmem>>, vector<1x1x4x4x8xf32>
    %74 = vector.shape_cast %73 : vector<1x1x4x4x8xf32> to vector<4x4x8xf32>
    %75 = vector.shape_cast %74 : vector<4x4x8xf32> to vector<16x8xf32>
    %c2 = arith.constant 2 : index
    %c0_95 = arith.constant 0 : index
    %c0_96 = arith.constant 0 : index
    %76 = vector.load %arg4[%c2, %c0_95, %c0_96] : memref<9x8x8xf32, #tpu.memory_space<vmem>>, vector<1x8x8xf32>
    %77 = vector.shape_cast %76 : vector<1x8x8xf32> to vector<8x8xf32>
    %cst_97 = arith.constant dense<0.000000e+00> : vector<16x8xf32>
    %78 = tpu.matmul %75, %77, %cst_97 {dimension_numbers = #tpu.dot_dimension_numbers<[1], [0], [0], [1], [0, 0, 1, 1], [], []>} : vector<16x8xf32>, vector<8x8xf32>, vector<16x8xf32> -> vector<16x8xf32>
    %79 = arith.addf %72, %78 : vector<16x8xf32>
    %c1_98 = arith.constant 1 : index
    %c0_99 = arith.constant 0 : index
    %c0_100 = arith.constant 0 : index
    %c0_101 = arith.constant 0 : index
    %c0_102 = arith.constant 0 : index
    %80 = vector.load %arg11[%c1_98, %c0_99, %c0_100, %c0_101, %c0_102] : memref<2x2x5x5x8xf32, #tpu.memory_space<vmem>>, vector<1x1x4x4x8xf32>
    %81 = vector.shape_cast %80 : vector<1x1x4x4x8xf32> to vector<4x4x8xf32>
    %82 = vector.shape_cast %81 : vector<4x4x8xf32> to vector<16x8xf32>
    %c3 = arith.constant 3 : index
    %c0_103 = arith.constant 0 : index
    %c0_104 = arith.constant 0 : index
    %83 = vector.load %arg4[%c3, %c0_103, %c0_104] : memref<9x8x8xf32, #tpu.memory_space<vmem>>, vector<1x8x8xf32>
    %84 = vector.shape_cast %83 : vector<1x8x8xf32> to vector<8x8xf32>
    %cst_105 = arith.constant dense<0.000000e+00> : vector<16x8xf32>
    %85 = tpu.matmul %82, %84, %cst_105 {dimension_numbers = #tpu.dot_dimension_numbers<[1], [0], [0], [1], [0, 0, 1, 1], [], []>} : vector<16x8xf32>, vector<8x8xf32>, vector<16x8xf32> -> vector<16x8xf32>
    %86 = arith.addf %79, %85 : vector<16x8xf32>
    %c1_106 = arith.constant 1 : index
    %c1_107 = arith.constant 1 : index
    %c0_108 = arith.constant 0 : index
    %c0_109 = arith.constant 0 : index
    %c0_110 = arith.constant 0 : index
    %87 = vector.load %arg11[%c1_106, %c1_107, %c0_108, %c0_109, %c0_110] : memref<2x2x5x5x8xf32, #tpu.memory_space<vmem>>, vector<1x1x4x4x8xf32>
    %88 = vector.shape_cast %87 : vector<1x1x4x4x8xf32> to vector<4x4x8xf32>
    %89 = vector.shape_cast %88 : vector<4x4x8xf32> to vector<16x8xf32>
    %c4 = arith.constant 4 : index
    %c0_111 = arith.constant 0 : index
    %c0_112 = arith.constant 0 : index
    %90 = vector.load %arg4[%c4, %c0_111, %c0_112] : memref<9x8x8xf32, #tpu.memory_space<vmem>>, vector<1x8x8xf32>
    %91 = vector.shape_cast %90 : vector<1x8x8xf32> to vector<8x8xf32>
    %cst_113 = arith.constant dense<0.000000e+00> : vector<16x8xf32>
    %92 = tpu.matmul %89, %91, %cst_113 {dimension_numbers = #tpu.dot_dimension_numbers<[1], [0], [0], [1], [0, 0, 1, 1], [], []>} : vector<16x8xf32>, vector<8x8xf32>, vector<16x8xf32> -> vector<16x8xf32>
    %93 = arith.addf %86, %92 : vector<16x8xf32>
    %c1_114 = arith.constant 1 : index
    %c0_115 = arith.constant 0 : index
    %c0_116 = arith.constant 0 : index
    %c1_117 = arith.constant 1 : index
    %c0_118 = arith.constant 0 : index
    %94 = vector.load %arg11[%c1_114, %c0_115, %c0_116, %c1_117, %c0_118] : memref<2x2x5x5x8xf32, #tpu.memory_space<vmem>>, vector<1x1x4x4x8xf32>
    %95 = vector.shape_cast %94 : vector<1x1x4x4x8xf32> to vector<4x4x8xf32>
    %96 = vector.shape_cast %95 : vector<4x4x8xf32> to vector<16x8xf32>
    %c5 = arith.constant 5 : index
    %c0_119 = arith.constant 0 : index
    %c0_120 = arith.constant 0 : index
    %97 = vector.load %arg4[%c5, %c0_119, %c0_120] : memref<9x8x8xf32, #tpu.memory_space<vmem>>, vector<1x8x8xf32>
    %98 = vector.shape_cast %97 : vector<1x8x8xf32> to vector<8x8xf32>
    %cst_121 = arith.constant dense<0.000000e+00> : vector<16x8xf32>
    %99 = tpu.matmul %96, %98, %cst_121 {dimension_numbers = #tpu.dot_dimension_numbers<[1], [0], [0], [1], [0, 0, 1, 1], [], []>} : vector<16x8xf32>, vector<8x8xf32>, vector<16x8xf32> -> vector<16x8xf32>
    %100 = arith.addf %93, %99 : vector<16x8xf32>
    %c0_122 = arith.constant 0 : index
    %c0_123 = arith.constant 0 : index
    %c1_124 = arith.constant 1 : index
    %c0_125 = arith.constant 0 : index
    %c0_126 = arith.constant 0 : index
    %101 = vector.load %arg11[%c0_122, %c0_123, %c1_124, %c0_125, %c0_126] : memref<2x2x5x5x8xf32, #tpu.memory_space<vmem>>, vector<1x1x4x4x8xf32>
    %102 = vector.shape_cast %101 : vector<1x1x4x4x8xf32> to vector<4x4x8xf32>
    %103 = vector.shape_cast %102 : vector<4x4x8xf32> to vector<16x8xf32>
    %c6 = arith.constant 6 : index
    %c0_127 = arith.constant 0 : index
    %c0_128 = arith.constant 0 : index
    %104 = vector.load %arg4[%c6, %c0_127, %c0_128] : memref<9x8x8xf32, #tpu.memory_space<vmem>>, vector<1x8x8xf32>
    %105 = vector.shape_cast %104 : vector<1x8x8xf32> to vector<8x8xf32>
    %cst_129 = arith.constant dense<0.000000e+00> : vector<16x8xf32>
    %106 = tpu.matmul %103, %105, %cst_129 {dimension_numbers = #tpu.dot_dimension_numbers<[1], [0], [0], [1], [0, 0, 1, 1], [], []>} : vector<16x8xf32>, vector<8x8xf32>, vector<16x8xf32> -> vector<16x8xf32>
    %107 = arith.addf %100, %106 : vector<16x8xf32>
    %c0_130 = arith.constant 0 : index
    %c1_131 = arith.constant 1 : index
    %c1_132 = arith.constant 1 : index
    %c0_133 = arith.constant 0 : index
    %c0_134 = arith.constant 0 : index
    %108 = vector.load %arg11[%c0_130, %c1_131, %c1_132, %c0_133, %c0_134] : memref<2x2x5x5x8xf32, #tpu.memory_space<vmem>>, vector<1x1x4x4x8xf32>
    %109 = vector.shape_cast %108 : vector<1x1x4x4x8xf32> to vector<4x4x8xf32>
    %110 = vector.shape_cast %109 : vector<4x4x8xf32> to vector<16x8xf32>
    %c7 = arith.constant 7 : index
    %c0_135 = arith.constant 0 : index
    %c0_136 = arith.constant 0 : index
    %111 = vector.load %arg4[%c7, %c0_135, %c0_136] : memref<9x8x8xf32, #tpu.memory_space<vmem>>, vector<1x8x8xf32>
    %112 = vector.shape_cast %111 : vector<1x8x8xf32> to vector<8x8xf32>
    %cst_137 = arith.constant dense<0.000000e+00> : vector<16x8xf32>
    %113 = tpu.matmul %110, %112, %cst_137 {dimension_numbers = #tpu.dot_dimension_numbers<[1], [0], [0], [1], [0, 0, 1, 1], [], []>} : vector<16x8xf32>, vector<8x8xf32>, vector<16x8xf32> -> vector<16x8xf32>
    %114 = arith.addf %107, %113 : vector<16x8xf32>
    %c0_138 = arith.constant 0 : index
    %c0_139 = arith.constant 0 : index
    %c1_140 = arith.constant 1 : index
    %c1_141 = arith.constant 1 : index
    %c0_142 = arith.constant 0 : index
    %115 = vector.load %arg11[%c0_138, %c0_139, %c1_140, %c1_141, %c0_142] : memref<2x2x5x5x8xf32, #tpu.memory_space<vmem>>, vector<1x1x4x4x8xf32>
    %116 = vector.shape_cast %115 : vector<1x1x4x4x8xf32> to vector<4x4x8xf32>
    %117 = vector.shape_cast %116 : vector<4x4x8xf32> to vector<16x8xf32>
    %c8 = arith.constant 8 : index
    %c0_143 = arith.constant 0 : index
    %c0_144 = arith.constant 0 : index
    %118 = vector.load %arg4[%c8, %c0_143, %c0_144] : memref<9x8x8xf32, #tpu.memory_space<vmem>>, vector<1x8x8xf32>
    %119 = vector.shape_cast %118 : vector<1x8x8xf32> to vector<8x8xf32>
    %cst_145 = arith.constant dense<0.000000e+00> : vector<16x8xf32>
    %120 = tpu.matmul %117, %119, %cst_145 {dimension_numbers = #tpu.dot_dimension_numbers<[1], [0], [0], [1], [0, 0, 1, 1], [], []>} : vector<16x8xf32>, vector<8x8xf32>, vector<16x8xf32> -> vector<16x8xf32>
    %121 = arith.addf %114, %120 : vector<16x8xf32>
    %c0_146 = arith.constant 0 : index
    %c0_147 = arith.constant 0 : index
    %122 = vector.load %arg5[%c0_146, %c0_147] : memref<1x8xf32, #tpu.memory_space<vmem>>, vector<1x8xf32>
    %123 = vector.broadcast %122 : vector<1x8xf32> to vector<16x8xf32>
    %124 = arith.addf %121, %123 : vector<16x8xf32>
    %cst_148 = arith.constant 0.000000e+00 : f32
    %125 = vector.broadcast %cst_148 : f32 to vector<16x8xf32>
    %126 = arith.maximumf %124, %125 : vector<16x8xf32>
    %c0_149 = arith.constant 0 : index
    %c0_150 = arith.constant 0 : index
    %127 = vector.load %arg6[%c0_149, %c0_150] : memref<8x32xf32, #tpu.memory_space<vmem>>, vector<8x32xf32>
    %cst_151 = arith.constant dense<0.000000e+00> : vector<16x32xf32>
    %128 = tpu.matmul %126, %127, %cst_151 {dimension_numbers = #tpu.dot_dimension_numbers<[1], [0], [0], [1], [0, 0, 1, 1], [], []>} : vector<16x8xf32>, vector<8x32xf32>, vector<16x32xf32> -> vector<16x32xf32>
    %c0_152 = arith.constant 0 : index
    %c0_153 = arith.constant 0 : index
    %129 = vector.load %arg7[%c0_152, %c0_153] : memref<1x32xf32, #tpu.memory_space<vmem>>, vector<1x32xf32>
    %130 = vector.broadcast %129 : vector<1x32xf32> to vector<16x32xf32>
    %131 = arith.addf %128, %130 : vector<16x32xf32>
    %c0_154 = arith.constant 0 : index
    %c0_155 = arith.constant 0 : index
    %c0_156 = arith.constant 0 : index
    %c0_157 = arith.constant 0 : index
    %c0_158 = arith.constant 0 : index
    %c0_159 = arith.constant 0 : index
    %132 = vector.load %arg1[%c0_154, %c0_155, %c0_156, %c0_157, %c0_158, %c0_159] : memref<1x2x2x4x4x16xf32, #tpu.memory_space<vmem>>, vector<1x1x1x4x4x16xf32>
    %133 = vector.shape_cast %132 : vector<1x1x1x4x4x16xf32> to vector<4x4x16xf32>
    %134 = vector.shape_cast %133 : vector<4x4x16xf32> to vector<16x16xf32>
    %c0_160 = arith.constant 0 : index
    %c0_161 = arith.constant 0 : index
    %135 = vector.load %arg8[%c0_160, %c0_161] : memref<16x32xf32, #tpu.memory_space<vmem>>, vector<16x32xf32>
    %cst_162 = arith.constant dense<0.000000e+00> : vector<16x32xf32>
    %136 = tpu.matmul %134, %135, %cst_162 {dimension_numbers = #tpu.dot_dimension_numbers<[1], [0], [0], [1], [0, 0, 1, 1], [], []>} : vector<16x16xf32>, vector<16x32xf32>, vector<16x32xf32> -> vector<16x32xf32>
    %137 = arith.addf %131, %136 : vector<16x32xf32>
    %c0_163 = arith.constant 0 : index
    %c0_164 = arith.constant 0 : index
    %138 = vector.load %arg9[%c0_163, %c0_164] : memref<1x32xf32, #tpu.memory_space<vmem>>, vector<1x32xf32>
    %139 = vector.broadcast %138 : vector<1x32xf32> to vector<16x32xf32>
    %140 = arith.addf %137, %139 : vector<16x32xf32>
    %cst_165 = arith.constant 0.000000e+00 : f32
    %141 = vector.broadcast %cst_165 : f32 to vector<16x32xf32>
    %142 = arith.maximumf %140, %141 : vector<16x32xf32>
    %143 = vector.shape_cast %142 : vector<16x32xf32> to vector<4x4x32xf32>
    %c0_166 = arith.constant 0 : index
    %c0_167 = arith.constant 0 : index
    %c0_168 = arith.constant 0 : index
    %c0_169 = arith.constant 0 : index
    %144 = vector.load %arg10[%c0_166, %c0_167, %c0_168, %c0_169] : memref<1x4x4x32xf32, #tpu.memory_space<vmem>>, vector<1x4x4x32xf32>
    %145 = vector.shape_cast %144 : vector<1x4x4x32xf32> to vector<4x4x32xf32>
    %146 = vector.shape_cast %143 : vector<4x4x32xf32> to vector<1x4x4x32xf32>
    tpu.vector_store %arg10[%c0_166, %c0_167, %c0_168, %c0_169], %146 {strides = array<i32>} : memref<1x4x4x32xf32, #tpu.memory_space<vmem>>, vector<1x4x4x32xf32>,
    return
  }
  func.func @transform_0(%arg0: i32) -> (i32, i32, i32, i32, i32, i32) {
    %c0_i32 = arith.constant 0 : i32
    %c0_i32_0 = arith.constant 0 : i32
    %c0_i32_1 = arith.constant 0 : i32
    %c0_i32_2 = arith.constant 0 : i32
    %c0_i32_3 = arith.constant 0 : i32
    %c0_i32_4 = arith.constant 0 : i32
    return %arg0, %c0_i32, %c0_i32_0, %c0_i32_1, %c0_i32_2, %c0_i32_3 : i32, i32, i32, i32, i32, i32
  }
  func.func @transform_1(%arg0: i32) -> (i32, i32) {
    %c0_i32 = arith.constant 0 : i32
    %c0_i32_0 = arith.constant 0 : i32
    %c0_i32_1 = arith.constant 0 : i32
    return %c0_i32, %c0_i32_0 : i32, i32
  }
  func.func @transform_2(%arg0: i32) -> (i32, i32) {
    %c0_i32 = arith.constant 0 : i32
    %c0_i32_0 = arith.constant 0 : i32
    %c0_i32_1 = arith.constant 0 : i32
    return %c0_i32, %c0_i32_0 : i32, i32
  }
  func.func @transform_3(%arg0: i32) -> (i32, i32, i32) {
    %c0_i32 = arith.constant 0 : i32
    %c0_i32_0 = arith.constant 0 : i32
    %c0_i32_1 = arith.constant 0 : i32
    %c0_i32_2 = arith.constant 0 : i32
    return %c0_i32, %c0_i32_0, %c0_i32_1 : i32, i32, i32
  }
  func.func @transform_4(%arg0: i32) -> (i32, i32) {
    %c0_i32 = arith.constant 0 : i32
    %c0_i32_0 = arith.constant 0 : i32
    %c0_i32_1 = arith.constant 0 : i32
    return %c0_i32, %c0_i32_0 : i32, i32
  }
  func.func @transform_5(%arg0: i32) -> (i32, i32) {
    %c0_i32 = arith.constant 0 : i32
    %c0_i32_0 = arith.constant 0 : i32
    %c0_i32_1 = arith.constant 0 : i32
    return %c0_i32, %c0_i32_0 : i32, i32
  }
  func.func @transform_6(%arg0: i32) -> (i32, i32) {
    %c0_i32 = arith.constant 0 : i32
    %c0_i32_0 = arith.constant 0 : i32
    %c0_i32_1 = arith.constant 0 : i32
    return %c0_i32, %c0_i32_0 : i32, i32
  }
  func.func @transform_7(%arg0: i32) -> (i32, i32) {
    %c0_i32 = arith.constant 0 : i32
    %c0_i32_0 = arith.constant 0 : i32
    %c0_i32_1 = arith.constant 0 : i32
    return %c0_i32, %c0_i32_0 : i32, i32
  }
  func.func @transform_8(%arg0: i32) -> (i32, i32) {
    %c0_i32 = arith.constant 0 : i32
    %c0_i32_0 = arith.constant 0 : i32
    %c0_i32_1 = arith.constant 0 : i32
    return %c0_i32, %c0_i32_0 : i32, i32
  }
  func.func @transform_9(%arg0: i32) -> (i32, i32, i32, i32) {
    %c0_i32 = arith.constant 0 : i32
    %c0_i32_0 = arith.constant 0 : i32
    %c0_i32_1 = arith.constant 0 : i32
    %c0_i32_2 = arith.constant 0 : i32
    return %arg0, %c0_i32, %c0_i32_0, %c0_i32_1 : i32, i32, i32, i32
  }
}

</mosaic_0001>

<bundles_post_ra>
// kernel: tpu_custom_call.1
= control target key start
LH: loop header
LB: loop body
LE: loop exit
PB: predicated region body
PF: predicated region fallthrough
CT: control target
= control target key end

     0   :  { %14 = vsyncpa [#allocation4], 0  ;;  %s1695_s0 = inlined_call_operand.vmem [shape: f32[2,2,2,4,4,16], index: 0, kind: input, shape index: {}]   ;;  %s1696_s1 = inlined_call_operand.vmem [shape: f32[16,8], index: 1, kind: input, shape index: {}]   ;;  %s1697_s2 = inlined_call_operand.vmem [shape: f32[1,8], index: 2, kind: input, shape index: {}]   ;;  %s1698_s3 = inlined_call_operand.vmem [shape: f32[9,8,8], index: 3, kind: input, shape index: {}]   ;;  %s1699_s4 = inlined_call_operand.vmem [shape: f32[1,8], index: 4, kind: input, shape index: {}]   ;;  %s1700_s5 = inlined_call_operand.vmem [shape: f32[8,32], index: 5, kind: input, shape index: {}]   ;;  %s1701_s6 = inlined_call_operand.vmem [shape: f32[1,32], index: 6, kind: input, shape index: {}]   ;;  %s1702_s7 = inlined_call_operand.vmem [shape: f32[16,32], index: 7, kind: input, shape index: {}]   ;;  %s1703_s8 = inlined_call_operand.vmem [shape: f32[1,32], index: 8, kind: input, shape index: {}]   ;;  %s1704_s9 = inlined_call_operand.hbm [shape: f32[2,4,4,32], index: 9, kind: output, shape index: {}]  }
   0x1   :  { %16 = vsyncpa [#allocation4 + $0x1], 0  ;;  %s1457_s30 = smov 0   ;;  %s1459_s10 = smov 0  }
   0x2   :  { %s1461_s11 = smov 0   ;;  %s1463_s12 = smov 0  }
   0x3 LB: > { %s1478_s13 = sadd.s32 4294967295, %s1402_s12   ;;  %s1225_s14 = sadd.s32 4294967294, %s1402_s12   ;;  %s1402_s12 = sphi %s1463_s12, %s1710_s12   ;;  %s1398_s11 = sphi %s1461_s11, %s1709_s11   ;;  %s1394_s10 = sphi %s1459_s10, %s1708_s10   ;;  %s1390_s30 = sphi %s1457_s30, %s1707_s30  }
   0x4   : > { %s1482_s15 = sadd.s32 1, %s1402_s12   ;;  %s223_s16 = sadd.s32 1, %s1398_s11 }
   0x5   : > { %s220_s17 = ssub.s32 %s1402_s12, %s1482_s15  ;;  %p233_p0 = scmp.ne.s32.totalorder %s1398_s11, %s1394_s10 }
   0x6   : > { %p221_p1 = scmp.eq.s32.totalorder %s220_s17, 0  ;;  %p234_p2 = scmp.eq.s32.totalorder %s1478_s13, 1 }
   0x7   : > { %p239_p3 = scmp.ne.s32.totalorder %s1394_s10, %s1390_s30  ;;  %p240_p4 = scmp.eq.s32.totalorder %s1225_s14, 1 }
   0x8   : > { %s1493_s18 = scalar_select %p221_p1, %s1398_s11, %s223_s16  }
   0x9   : > { %p1495_p5 = por %p234_p2, %p233_p0  ;;  %p1499_p6 = por %p240_p4, %p239_p3 }
   0xa   : > { %p1228_p7 = scmp.ge.s32.totalorder %s1402_s12, 1  ;;  %p290_p8 = scmp.lt.s32.totalorder %s1402_s12, 3 }
   0xc   : > { %p291_p9 = pnand %p1228_p7, %p290_p8 }
   0xd   : > { %p326_p10 = scmp.lt.s32.totalorder (!%p291_p9), %s1478_s13, 1  ;;  %s323_s17 = sand.u32 (!%p291_p9), 1, %s1394_s10  }
   0xe   : > { %294 = sbr.rel (%p291_p9) target bundleno = 560 (0x230), region = 56  ;;  %s1229_s23 = sshll.u32 (!%p291_p9), %s323_s17, 4 }
   0xf   : > { %s1288_s24 = sshll.u32 (!%p291_p9), %s1478_s13, 4 }
  0x13   : > { %v357_v0 = vld [vmem:[%s1696_s1 + $0x8] sm:$0xff]  ;;  %v356_v1 = vld [vmem:[%s1696_s1] sm:$0xff]  ;;  %s327_s25 = scalar_select %p326_p10, %s1478_s13, 1  ;;  %vm375_vm0 = vcmask 130048   ;;  %vm331_vm1 = vcmask 61440   ;;  %v1404_v13 = vmov 0.0  }
  0x14   : > { %1289 = vmatpush.msra.mxu3 %v357_v0  ;;  %523 = vmatpush.msra.mxu2 %v357_v0  ;;  %349 = vst.msk [vmem:[#allocation2 + $0x88] sm:$0x1f] %vm331_vm1, %v1404_v13  ;;  %v1333_v28 = vld [vmem:[%s1697_s2] ss:$0 sm:$0xff]  ;;  %vm412_vm2 = vcmask 60416   ;;  %v1252_v33 = vld [vmem:[%s1698_s3 + $0x8] sm:$0xff] }
  0x15   : > { %459 = vmatpush.msra.mxu1 %v357_v0  ;;  %394 = vmatpush.msra.mxu0 %v357_v0  ;;  %s1287_s26 = sshll.u32 %s327_s25, 6  ;;  %350 = vst.msk [vmem:[#allocation2 + $0x90] sm:$0x1f] %vm331_vm1, %v1404_v13  ;;  %v1336_v34 = vld [vmem:[%s1697_s2] ss:$0 sm:$0xff]  ;;  %v1257_v53 = vld [vmem:[%s1698_s3 + $0x10] sm:$0xff] }
  0x16   : > { %1290 = vmatpush.msra.mxu3 %v356_v1  ;;  %524 = vmatpush.msra.mxu2 %v356_v1  ;;  %s1516_s29 = scalar_lea.vmem %s1695_s0, %s1287_s26  ;;  %332 = vst.msk [vmem:[#allocation2] sm:$0x1f] %vm331_vm1, %v1404_v13  ;;  %v1334_v36 = vld [vmem:[%s1697_s2] ss:$0 sm:$0xff]  ;;  %v1260_v59 = vld [vmem:[%s1698_s3 + $0x18] sm:$0xff]  ;;  %vm634_vm3 = vcmask 64512  }
  0x17   : > { %460 = vmatpush.msra.mxu1 %v356_v1  ;;  %395 = vmatpush.msra.mxu0 %v356_v1  ;;  %v354_v2 = vld [vmem:[%s1516_s29 + $0x8] sm:$0xf]  ;;  %v355_v3 = vld [vmem:[%s1516_s29 + $0xc] sm:$0xf]  ;;  %v352_v4 = vld [vmem:[%s1516_s29] sm:$0xf] }
  0x18   : > { %587 = vmatpush.msrb.mxu3 %v357_v0  ;;  %370 = vst [vmem:[#allocation1 + $0x10] ss:$2 sm:$0xff] %v354_v2  ;;  %v353_v5 = vld [vmem:[%s1516_s29 + $0x4] sm:$0xf]  ;;  %v1236_v6 = vld [vmem:[%s1516_s29 + $0x18] sm:$0xf]  ;;  %740 = vmatpush.msrb.mxu2 %v1257_v53 }
  0x19   : > { %372 = vst [vmem:[#allocation1 + $0x11] ss:$2 sm:$0xff] %v355_v3  ;;  %v1237_v7 = vld [vmem:[%s1516_s29 + $0x1c] sm:$0xf]  ;;  %v1234_v9 = vld [vmem:[%s1516_s29 + $0x10] sm:$0xf]  ;;  %654 = vmatpush.msrb.mxu0 %v1252_v33 }
  0x1a   : > { %588 = vmatpush.msrb.mxu3 %v356_v1  ;;  %366 = vst [vmem:[#allocation1] ss:$2 sm:$0xff] %v352_v4  ;;  %v1235_v10 = vld [vmem:[%s1516_s29 + $0x14] sm:$0xf]  ;;  %v1242_v12 = vld [vmem:[%s1516_s29 + $0x28] sm:$0xf] }
  0x1b   : > { %368 = vst [vmem:[#allocation1 + $0x1] ss:$2 sm:$0xff] %v353_v5  ;;  %v1240_v14 = vld [vmem:[%s1516_s29 + $0x20] sm:$0xf]  ;;  %v1243_v15 = vld [vmem:[%s1516_s29 + $0x2c] sm:$0xf] }
  0x1c   : > { %v1241_v17 = vld [vmem:[%s1516_s29 + $0x24] sm:$0xf]  ;;  %333 = vst.msk [vmem:[#allocation2 + $0x8] sm:$0x1f] %vm331_vm1, %v1404_v13  ;;  %v1248_v19 = vld [vmem:[%s1516_s29 + $0x38] sm:$0xf] }
  0x1d   : > { %334 = vst.msk [vmem:[#allocation2 + $0x10] sm:$0x1f] %vm331_vm1, %v1404_v13  ;;  %v1246_v20 = vld [vmem:[%s1516_s29 + $0x30] sm:$0xf]  ;;  %v1249_v21 = vld [vmem:[%s1516_s29 + $0x3c] sm:$0xf] }
  0x1e   : > { %335 = vst.msk [vmem:[#allocation2 + $0x18] sm:$0x1f] %vm331_vm1, %v1404_v13  ;;  %v1247_v23 = vld [vmem:[%s1516_s29 + $0x34] sm:$0xf]  ;;  %v613_v42 = vld [vmem:[%s1698_s3] sm:$0xff]  ;;  %vm1142_vm4 = vcmask 257024  }
  0x1f   : > { %336 = vst.msk [vmem:[#allocation2 + $0x20] sm:$0x1f] %vm331_vm1, %v1404_v13  ;;  %694 = vmatpush.msrb.mxu1 %v613_v42  ;;  %v1335_v49 = vld [vmem:[%s1697_s2] ss:$0 sm:$0xff]  ;;  %v609_v3 = vld [vmem:[#allocation2] sm:$0xf] }
  0x20   : > { %v374_v8 = vld.sshfl [vmem:[#allocation1 + $0x10] sm:$0xff pattern:$0x75316420]  ;;  %337 = vst.msk [vmem:[#allocation2 + $0x28] sm:$0x1f] %vm331_vm1, %v1404_v13  ;;  %s325_s25 = scalar_lea.vmem [#allocation3], %s1229_s23 }
  0x21   : > { %1233 = vmatmul.msk.f32.vlgmr.msra.gmra.mxu3 %vm375_vm0, %v374_v8  ;;  %436 = vst [vmem:[#allocation1 + $0x10] ss:$2 sm:$0xff] %v1236_v6  ;;  %s1160_s28 = sshll.u32 %s325_s25, 4  ;;  %s1148_s13 = scalar_lea.sflag [#allocation4], %s323_s17  ;;  %s1161_s28 = int_to_ptr.vmem [resolvable:$true] %s1160_s28 }
  0x22   : > { %v373_v11 = vld.sshfl [vmem:[#allocation1] sm:$0xff pattern:$0x75316420]  ;;  %438 = vst [vmem:[#allocation1 + $0x11] ss:$2 sm:$0xff] %v1237_v7  ;;  %788 = vmatpush.msra.mxu3 %v1260_v59 }
  0x23   : > { %432 = vst [vmem:[#allocation1] ss:$2 sm:$0xff] %v1234_v9  ;;  %1232 = vmatmul.msk.f32.vlgmr.msra.gmra.mxu0 %vm375_vm0, %v373_v11  ;;  %v1263_v7 = vld [vmem:[%s1698_s3 + $0x20] sm:$0xff] }
  0x24   : > { %434 = vst [vmem:[#allocation1 + $0x1] ss:$2 sm:$0xff] %v1235_v10  ;;  %836 = vmatpush.msra.mxu0 %v1263_v7 }
  0x25   : > { %338 = vst.msk [vmem:[#allocation2 + $0x30] sm:$0x1f] %vm331_vm1, %v1404_v13 }
  0x26   : > { %339 = vst.msk [vmem:[#allocation2 + $0x38] sm:$0x1f] %vm331_vm1, %v1404_v13 }
  0x27   : > { %340 = vst.msk [vmem:[#allocation2 + $0x40] sm:$0x1f] %vm331_vm1, %v1404_v13  ;;  %v615_v27 = vld [vmem:[#allocation2 + $0x28] sm:$0xf] }
  0x28   : > { %341 = vst.msk [vmem:[#allocation2 + $0x48] sm:$0x1f] %vm331_vm1, %v1404_v13 }
  0x29   : > { %v440_v16 = vld.sshfl [vmem:[#allocation1 + $0x10] sm:$0xff pattern:$0x75316420]  ;;  %342 = vst.msk [vmem:[#allocation2 + $0x50] sm:$0x1f] %vm331_vm1, %v1404_v13 }
  0x2a   : > { %500 = vst [vmem:[#allocation1 + $0x10] ss:$2 sm:$0xff] %v1242_v12 }
  0x2b   : > { %v439_v18 = vld.sshfl [vmem:[#allocation1] sm:$0xff pattern:$0x75316420]  ;;  %502 = vst [vmem:[#allocation1 + $0x11] ss:$2 sm:$0xff] %v1243_v15 }
  0x2c   : > { %496 = vst [vmem:[#allocation1] ss:$2 sm:$0xff] %v1240_v14  ;;  %1238 = vmatmul.msk.f32.vlgmr.msra.gmra.mxu1 %vm375_vm0, %v439_v18  ;;  %v1266_v14 = vld [vmem:[%s1698_s3 + $0x28] sm:$0xff] }
  0x2d   : > { %498 = vst [vmem:[#allocation1 + $0x1] ss:$2 sm:$0xff] %v1241_v17  ;;  %884 = vmatpush.msra.mxu1 %v1266_v14 }
  0x2e   : > { %343 = vst.msk [vmem:[#allocation2 + $0x58] sm:$0x1f] %vm331_vm1, %v1404_v13 }
  0x2f   : > { %344 = vst.msk [vmem:[#allocation2 + $0x60] sm:$0x1f] %vm331_vm1, %v1404_v13 }
  0x30   : > { %345 = vst.msk [vmem:[#allocation2 + $0x68] sm:$0x1f] %vm331_vm1, %v1404_v13 }
  0x31   : > { %347 = vst.msk [vmem:[#allocation2 + $0x78] sm:$0x1f] %vm331_vm1, %v1404_v13 }
  0x32   : > { %v504_v22 = vld.sshfl [vmem:[#allocation1 + $0x10] sm:$0xff pattern:$0x75316420]  ;;  %348 = vst.msk [vmem:[#allocation2 + $0x80] sm:$0x1f] %vm331_vm1, %v1404_v13 }
  0x33   : > { %564 = vst [vmem:[#allocation1 + $0x10] ss:$2 sm:$0xff] %v1248_v19  ;;  %v1269_v13 = vld [vmem:[%s1698_s3 + $0x30] sm:$0xff] }
  0x34   : > { %v503_v24 = vld.sshfl [vmem:[#allocation1] sm:$0xff pattern:$0x75316420]  ;;  %566 = vst [vmem:[#allocation1 + $0x11] ss:$2 sm:$0xff] %v1249_v21  ;;  %1239 = vmatmul.msk.f32.gmra.mxu1 %vm375_vm0, %v440_v16  ;;  %v1272_v21 = vld [vmem:[%s1698_s3 + $0x38] sm:$0xff] }
  0x35   : > { %1244 = vmatmul.msk.f32.vlgmr.msra.gmra.mxu2 %vm375_vm0, %v503_v24  ;;  %560 = vst [vmem:[#allocation1] ss:$2 sm:$0xff] %v1246_v20  ;;  %v702_v16 = vld [vmem:[#allocation2 + $0x1] sm:$0xf] }
  0x36   : > { %562 = vst [vmem:[#allocation1 + $0x1] ss:$2 sm:$0xff] %v1247_v23  ;;  %932 = vmatpush.msra.mxu2 %v1269_v13 }
  0x3b   : > { %v568_v26 = vld.sshfl [vmem:[#allocation1 + $0x10] sm:$0xff pattern:$0x75316420] }
  0x3d   : > { %1245 = vmatmul.msk.f32.gmra.mxu2 %vm375_vm0, %v504_v22  ;;  %v567_v25 = vld.sshfl [vmem:[#allocation1] sm:$0xff pattern:$0x75316420] }
  0x3e   : > { %1250 = vmatmul.msk.f32.vlgmr.msrb.gmra.mxu3 %vm375_vm0, %v567_v25  ;;  %625 = vst [vmem:[#allocation1] ss:$2 sm:$0xff] %v615_v27 }
  0x3f   : > { %980 = vmatpush.msrb.mxu3 %v1272_v21 }
  0x46   : > { %1251 = vmatmul.msk.f32.gmra.mxu3 %vm375_vm0, %v568_v26 }
  0xa0   : > { %v397_v44 = vpop.f32.mrf.mxu0 }
  0xa1   : > { %v398_v47 = vadd.f32 %v1333_v28, %v397_v44 }
  0xa3   : > { %v403_v50 = vmax.f32 %v398_v47, 0.0 }
  0xa4   : > { %v400_v29 = vpop.f32.mrf.mxu3 }
  0xa5   : > { %v401_v30 = vadd.f32 %v1333_v28, %v400_v29  ;;  %v407_v56 = vrot.slane %v403_v50, 4  ;;  %413 = vst.msk [vmem:[#allocation2 + $0x78] sm:$0xf] %vm412_vm2, %v403_v50  ;;  %v1275_v29 = vld [vmem:[%s1698_s3 + $0x40] sm:$0xff] }
  0xa7   : > { %v404_v31 = vmax.f32 %v401_v30, 0.0  ;;  %414 = vst.msk [vmem:[#allocation2 + $0x80] sm:$0xf] %vm412_vm2, %v407_v56 }
  0xa9   : > { %v408_v32 = vrot.slane %v404_v31, 4  ;;  %415 = vst.msk [vmem:[#allocation2 + $0x88] sm:$0xf] %vm412_vm2, %v404_v31  ;;  %v462_v35 = vpop.f32.mrf.mxu1 }
  0xaa   : > { %v463_v37 = vadd.f32 %v1336_v34, %v462_v35 }
  0xab   : > { %416 = vst.msk [vmem:[#allocation2 + $0x90] sm:$0xf] %vm412_vm2, %v408_v32 }
  0xac   : > { %v468_v38 = vmax.f32 %v463_v37, 0.0  ;;  %v798_v31 = vld [vmem:[#allocation2 + $0x78] sm:$0xf] }
  0xae   : > { %v472_v41 = vrot.slane %v468_v38, 4  ;;  %477 = vst.msk [vmem:[#allocation2 + $0x51] sm:$0xf] %vm412_vm2, %v468_v38  ;;  %v799_v30 = vld [vmem:[#allocation2 + $0x80] sm:$0xf] }
  0xb0   : > { %478 = vst.msk [vmem:[#allocation2 + $0x59] sm:$0xf] %vm412_vm2, %v472_v41  ;;  %v800_v33 = vld [vmem:[#allocation2 + $0x88] sm:$0xf] }
  0xb1   : > { %v465_v45 = vpop.f32.mrf.mxu1 }
  0xb2   : > { %v466_v48 = vadd.f32 %v1336_v34, %v465_v45  ;;  %v801_v35 = vld [vmem:[#allocation2 + $0x90] sm:$0xf] }
  0xb4   : > { %v469_v51 = vmax.f32 %v466_v48, 0.0 }
  0xb5   : > { %v750_v24 = vld [vmem:[#allocation2 + $0x50] sm:$0xf] }
  0xb6   : > { %479 = vst.msk [vmem:[#allocation2 + $0x61] sm:$0xf] %vm412_vm2, %v469_v51  ;;  %v473_v1 = vrot.slane %v469_v51, 4 }
  0xb7   : > { %v751_v23 = vld [vmem:[#allocation2 + $0x58] sm:$0xf] }
  0xb8   : > { %v526_v39 = vpop.f32.mrf.mxu2  ;;  %480 = vst.msk [vmem:[#allocation2 + $0x69] sm:$0xf] %vm412_vm2, %v473_v1  ;;  %v847_v38 = vld [vmem:[#allocation2 + $0x59] sm:$0xf] }
  0xb9   : > { %v527_v40 = vadd.f32 %v1334_v36, %v526_v39  ;;  %v1080_v1 = vld [vmem:[%s1516_s29] sm:$0xf] }
  0xbb   : > { %v532_v43 = vmax.f32 %v527_v40, 0.0 }
  0xbd   : > { %v536_v46 = vrot.slane %v532_v43, 4  ;;  %541 = vst.msk [vmem:[#allocation2 + $0x30] sm:$0xf] %vm412_vm2, %v532_v43  ;;  %v752_v27 = vld [vmem:[#allocation2 + $0x60] sm:$0xf] }
  0xbe   : > { %v848_v39 = vld [vmem:[#allocation2 + $0x61] sm:$0xf] }
  0xbf   : > { %542 = vst.msk [vmem:[#allocation2 + $0x38] sm:$0xf] %vm412_vm2, %v536_v46  ;;  %v753_v26 = vld [vmem:[#allocation2 + $0x68] sm:$0xf] }
  0xc0   : > { %v529_v52 = vpop.f32.mrf.mxu2  ;;  %v849_v41 = vld [vmem:[#allocation2 + $0x69] sm:$0xf] }
  0xc1   : > { %v530_v54 = vadd.f32 %v1334_v36, %v529_v52  ;;  %v590_v55 = vpop.f32.mrf.mxu3  ;;  %v846_v36 = vld [vmem:[#allocation2 + $0x51] sm:$0xf] }
  0xc2   : > { %v591_v57 = vadd.f32 %v1335_v49, %v590_v55 }
  0xc3   : > { %v533_v58 = vmax.f32 %v530_v54, 0.0 }
  0xc4   : > { %v616_v60 = vld [vmem:[#allocation2 + $0x30] sm:$0xf]  ;;  %v596_v61 = vmax.f32 %v591_v57, 0.0 }
  0xc5   : > { %627 = vst [vmem:[#allocation1 + $0x1] ss:$2 sm:$0xff] %v616_v60  ;;  %v537_v62 = vrot.slane %v533_v58, 4  ;;  %v942_v48 = vld [vmem:[#allocation2 + $0x30] sm:$0xf] }
  0xc6   : > { %v617_v63 = vld [vmem:[#allocation2 + $0x38] sm:$0xf]  ;;  %543 = vst.msk [vmem:[#allocation2 + $0x40] sm:$0xf] %vm412_vm2, %v533_v58  ;;  %v600_v0 = vrot.slane %v596_v61, 4 }
  0xc7   : > { %629 = vst [vmem:[#allocation1 + $0x10] ss:$2 sm:$0xff] %v617_v63  ;;  %v943_v50 = vld [vmem:[#allocation2 + $0x38] sm:$0xf] }
  0xc8   : > { %544 = vst.msk [vmem:[#allocation2 + $0x48] sm:$0xf] %vm412_vm2, %v537_v62  ;;  %v1085_v62 = vld [vmem:[%s1702_s7 + $0x8] sm:$0xff]  ;;  %v1046_v63 = vld [vmem:[%s1700_s5] sm:$0xff] }
  0xc9   : > { %605 = vst.msk [vmem:[#allocation2 + $0x9] sm:$0xf] %vm412_vm2, %v596_v61  ;;  %v593_v2 = vpop.f32.mrf.mxu3 }
  0xca   : > { %606 = vst.msk [vmem:[#allocation2 + $0x11] sm:$0xf] %vm412_vm2, %v600_v0  ;;  %v594_v4 = vadd.f32 %v1335_v49, %v593_v2  ;;  %v1084_v0 = vld [vmem:[%s1702_s7] sm:$0xff] }
  0xcb   : > { %v1081_v2 = vld [vmem:[%s1516_s29 + $0x4] sm:$0xf] }
  0xcc   : > { %v632_v5 = vld.sshfl [vmem:[#allocation1] sm:$0xff pattern:$0x75316420]  ;;  %v597_v6 = vmax.f32 %v594_v4, 0.0  ;;  %v1082_v4 = vld [vmem:[%s1516_s29 + $0x8] sm:$0xf] }
  0xcd   : > { %v618_v8 = vld [vmem:[#allocation2 + $0x40] sm:$0xf]  ;;  %666 = vst [vmem:[#allocation1] ss:$2 sm:$0xff] %v609_v3  ;;  %1253 = vmatmul.msk.f32.vlgmr.msrb.gmra.mxu0 %vm634_vm3, %v632_v5  ;;  %v1083_v5 = vld [vmem:[%s1516_s29 + $0xc] sm:$0xf]  ;;  %s1159_s29 = scalar_lea.hbm %s1704_s9, %s1288_s24 }
  0xce   : > { %631 = vst [vmem:[#allocation1 + $0x11] ss:$2 sm:$0xff] %v618_v8  ;;  %v601_v9 = vrot.slane %v597_v6, 4  ;;  %1028 = vmatpush.msrb.mxu0 %v1275_v29  ;;  %v944_v51 = vld [vmem:[#allocation2 + $0x40] sm:$0xf]  ;;  %s1162_s14 = sshll.u32 %s1159_s29, 4  ;;  %s1163_s14 = int_to_ptr.hbm [resolvable:$true] %s1162_s14 }
  0xcf   : > { %607 = vst.msk [vmem:[#allocation2 + $0x19] sm:$0xf] %vm412_vm2, %v597_v6  ;;  %v945_v53 = vld [vmem:[#allocation2 + $0x48] sm:$0xf]  ;;  %s1354_s16 = sshra.s32 %s1163_s14, 4  ;;  %s1360_s24 = scalar_lea.hbm %s1704_s9, 32  ;;  %s1355_s16 = int_to_ptr.hbm [resolvable:$true] %s1354_s16 }
  0xd0   : > { %v610_v10 = vld [vmem:[#allocation2 + $0x8] sm:$0xf]  ;;  %608 = vst.msk [vmem:[#allocation2 + $0x21] sm:$0xf] %vm412_vm2, %v601_v9  ;;  %s1356_s21 = scalar_lea.hbm %s1355_s16, 16  ;;  %p1361_p0 = scmp.lt.s32.totalorder %s1355_s16, %s1704_s9 }
  0xd1   : > { %668 = vst [vmem:[#allocation1 + $0x1] ss:$2 sm:$0xff] %v610_v10  ;;  %v611_v11 = vld [vmem:[#allocation2 + $0x10] sm:$0xf]  ;;  %v703_v18 = vld [vmem:[#allocation2 + $0x9] sm:$0xf]  ;;  %p1357_p11 = scmp.ne.s32.totalorder %s1355_s16, %s1356_s21  ;;  %p1362_p1 = scmp.lt.s32.totalorder %s1360_s24, %s1356_s21 }
  0xd2   : > { %v704_v22 = vld [vmem:[#allocation2 + $0x11] sm:$0xf]  ;;  %v894_v42 = vld [vmem:[#allocation2 + $0x8] sm:$0xf] }
  0xd3   : > { %v895_v44 = vld [vmem:[#allocation2 + $0x10] sm:$0xf]  ;;  %v990_v54 = vld [vmem:[#allocation2 + $0x9] sm:$0xf]  ;;  %p1358_p12 = pnand %p1357_p11, %p1495_p5  ;;  %p1363_p2 = por %p1362_p1, %p1361_p0 }
  0xd4   : > { %v991_v56 = vld [vmem:[#allocation2 + $0x11] sm:$0xf] }
  0xd5   : > { %v633_v12 = vld.sshfl [vmem:[#allocation1 + $0x10] sm:$0xff pattern:$0x75316420]  ;;  %p1359_p13 = pneg %p1358_p12 }
  0xd6   : > { %670 = vst [vmem:[#allocation1 + $0x10] ss:$2 sm:$0xff] %v611_v11  ;;  %v612_v15 = vld [vmem:[#allocation2 + $0x18] sm:$0xf]  ;;  %1254 = vmatmul.msk.f32.gmra.mxu0 %vm634_vm3, %v633_v12 }
  0xd7   : > { %672 = vst [vmem:[#allocation1 + $0x11] ss:$2 sm:$0xff] %v612_v15  ;;  %v705_v20 = vld [vmem:[#allocation2 + $0x19] sm:$0xf]  ;;  %v897_v47 = vld [vmem:[#allocation2 + $0x20] sm:$0xf]  ;;  %p1364_p3 = pnand %p1363_p2, %p1359_p13 }
  0xd8   : > { %v673_v17 = vld.sshfl [vmem:[#allocation1] sm:$0xff pattern:$0x75316420]  ;;  %v993_v59 = vld [vmem:[#allocation2 + $0x21] sm:$0xf] }
  0xd9   : > { %714 = vst [vmem:[#allocation1 + $0x1] ss:$2 sm:$0xff] %v703_v18  ;;  %1255 = vmatmul.msk.f32.vlgmr.msrb.gmra.mxu1 %vm634_vm3, %v673_v17  ;;  %v896_v45 = vld [vmem:[#allocation2 + $0x18] sm:$0xf] }
  0xda   : > { %712 = vst [vmem:[#allocation1] ss:$2 sm:$0xff] %v702_v16  ;;  %v992_v57 = vld [vmem:[#allocation2 + $0x19] sm:$0xf]  ;;  %1072 = vmatpush.msrb.mxu1 %v1046_v63 }
  0xde   : > { %v674_v19 = vld.sshfl [vmem:[#allocation1 + $0x10] sm:$0xff pattern:$0x75316420] }
  0xdf   : > { %718 = vst [vmem:[#allocation1 + $0x11] ss:$2 sm:$0xff] %v705_v20 }
  0xe0   : > { %716 = vst [vmem:[#allocation1 + $0x10] ss:$2 sm:$0xff] %v704_v22 }
  0xe1   : > { %1256 = vmatmul.msk.f32.gmra.mxu1 %vm634_vm3, %v674_v19  ;;  %v719_v25 = vld.sshfl [vmem:[#allocation1] sm:$0xff pattern:$0x75316420] }
  0xe2   : > { %1258 = vmatmul.msk.f32.vlgmr.msrb.gmra.mxu2 %vm634_vm3, %v719_v25  ;;  %760 = vst [vmem:[#allocation1] ss:$2 sm:$0xff] %v750_v24 }
  0xe3   : > { %762 = vst [vmem:[#allocation1 + $0x1] ss:$2 sm:$0xff] %v751_v23  ;;  %1117 = vmatpush.msrb.mxu2 %v1085_v62 }
  0xe5   : > { %1118 = vmatpush.msrb.mxu2 %v1084_v0 }
  0xe7   : > { %v720_v28 = vld.sshfl [vmem:[#allocation1 + $0x10] sm:$0xff pattern:$0x75316420] }
  0xe8   : > { %764 = vst [vmem:[#allocation1 + $0x10] ss:$2 sm:$0xff] %v752_v27 }
  0xe9   : > { %766 = vst [vmem:[#allocation1 + $0x11] ss:$2 sm:$0xff] %v753_v26 }
  0xea   : > { %1259 = vmatmul.msk.f32.gmra.mxu2 %vm634_vm3, %v720_v28  ;;  %v767_v32 = vld.sshfl [vmem:[#allocation1] sm:$0xff pattern:$0x75316420] }
  0xeb   : > { %1261 = vmatmul.msk.f32.vlgmr.msra.gmra.mxu3 %vm634_vm3, %v767_v32  ;;  %808 = vst [vmem:[#allocation1] ss:$2 sm:$0xff] %v798_v31  ;;  %v1337_v31 = vld [vmem:[%s1699_s4] ss:$0 sm:$0xff] }
  0xec   : > { %810 = vst [vmem:[#allocation1 + $0x1] ss:$2 sm:$0xff] %v799_v30 }
  0xf0   : > { %v768_v34 = vld.sshfl [vmem:[#allocation1 + $0x10] sm:$0xff pattern:$0x75316420] }
  0xf1   : > { %812 = vst [vmem:[#allocation1 + $0x10] ss:$2 sm:$0xff] %v800_v33 }
  0xf2   : > { %814 = vst [vmem:[#allocation1 + $0x11] ss:$2 sm:$0xff] %v801_v35 }
  0xf3   : > { %1262 = vmatmul.msk.f32.gmra.mxu3 %vm634_vm3, %v768_v34  ;;  %v815_v37 = vld.sshfl [vmem:[#allocation1] sm:$0xff pattern:$0x75316420] }
  0xf4   : > { %1264 = vmatmul.msk.f32.vlgmr.msra.gmra.mxu0 %vm634_vm3, %v815_v37  ;;  %856 = vst [vmem:[#allocation1] ss:$2 sm:$0xff] %v846_v36 }
  0xf5   : > { %858 = vst [vmem:[#allocation1 + $0x1] ss:$2 sm:$0xff] %v847_v38 }
  0xf9   : > { %v816_v40 = vld.sshfl [vmem:[#allocation1 + $0x10] sm:$0xff pattern:$0x75316420] }
  0xfa   : > { %860 = vst [vmem:[#allocation1 + $0x10] ss:$2 sm:$0xff] %v848_v39 }
  0xfb   : > { %862 = vst [vmem:[#allocation1 + $0x11] ss:$2 sm:$0xff] %v849_v41 }
  0xfc   : > { %1265 = vmatmul.msk.f32.gmra.mxu0 %vm634_vm3, %v816_v40  ;;  %v863_v43 = vld.sshfl [vmem:[#allocation1] sm:$0xff pattern:$0x75316420] }
  0xfd   : > { %1267 = vmatmul.msk.f32.vlgmr.msra.gmra.mxu1 %vm634_vm3, %v863_v43  ;;  %904 = vst [vmem:[#allocation1] ss:$2 sm:$0xff] %v894_v42 }
  0xfe   : > { %906 = vst [vmem:[#allocation1 + $0x1] ss:$2 sm:$0xff] %v895_v44 }
 0x102   : > { %v864_v46 = vld.sshfl [vmem:[#allocation1 + $0x10] sm:$0xff pattern:$0x75316420] }
 0x103   : > { %908 = vst [vmem:[#allocation1 + $0x10] ss:$2 sm:$0xff] %v896_v45 }
 0x104   : > { %910 = vst [vmem:[#allocation1 + $0x11] ss:$2 sm:$0xff] %v897_v47 }
 0x105   : > { %1268 = vmatmul.msk.f32.gmra.mxu1 %vm634_vm3, %v864_v46  ;;  %v911_v49 = vld.sshfl [vmem:[#allocation1] sm:$0xff pattern:$0x75316420] }
 0x106   : > { %1270 = vmatmul.msk.f32.vlgmr.msra.gmra.mxu2 %vm634_vm3, %v911_v49  ;;  %952 = vst [vmem:[#allocation1] ss:$2 sm:$0xff] %v942_v48  ;;  %v1338_v46 = vld [vmem:[%s1701_s6] ss:$0 sm:$0xff] }
 0x107   : > { %954 = vst [vmem:[#allocation1 + $0x1] ss:$2 sm:$0xff] %v943_v50  ;;  %v1339_v50 = vld [vmem:[%s1703_s8] ss:$0 sm:$0xff] }
 0x10b   : > { %v912_v52 = vld.sshfl [vmem:[#allocation1 + $0x10] sm:$0xff pattern:$0x75316420] }
 0x10c   : > { %956 = vst [vmem:[#allocation1 + $0x10] ss:$2 sm:$0xff] %v944_v51 }
 0x10d   : > { %958 = vst [vmem:[#allocation1 + $0x11] ss:$2 sm:$0xff] %v945_v53 }
 0x10e   : > { %1271 = vmatmul.msk.f32.gmra.mxu2 %vm634_vm3, %v912_v52  ;;  %v959_v55 = vld.sshfl [vmem:[#allocation1] sm:$0xff pattern:$0x75316420] }
 0x10f   : > { %1273 = vmatmul.msk.f32.vlgmr.msrb.gmra.mxu3 %vm634_vm3, %v959_v55  ;;  %1000 = vst [vmem:[#allocation1] ss:$2 sm:$0xff] %v990_v54 }
 0x110   : > { %1002 = vst [vmem:[#allocation1 + $0x1] ss:$2 sm:$0xff] %v991_v56 }
 0x114   : > { %v960_v58 = vld.sshfl [vmem:[#allocation1 + $0x10] sm:$0xff pattern:$0x75316420] }
 0x115   : > { %1004 = vst [vmem:[#allocation1 + $0x10] ss:$2 sm:$0xff] %v992_v57 }
 0x116   : > { %1006 = vst [vmem:[#allocation1 + $0x11] ss:$2 sm:$0xff] %v993_v59 }
 0x117   : > { %1274 = vmatmul.msk.f32.gmra.mxu3 %vm634_vm3, %v960_v58  ;;  %v1007_v60 = vld.sshfl [vmem:[#allocation1] sm:$0xff pattern:$0x75316420] }
 0x118   : > { %1276 = vmatmul.msk.f32.vlgmr.msrb.gmra.mxu0 %vm634_vm3, %v1007_v60  ;;  %1090 = vst [vmem:[#allocation1] ss:$2 sm:$0xff] %v1080_v1 }
 0x119   : > { %1092 = vst [vmem:[#allocation1 + $0x1] ss:$2 sm:$0xff] %v1081_v2 }
 0x11d   : > { %v1008_v61 = vld.sshfl [vmem:[#allocation1 + $0x10] sm:$0xff pattern:$0x75316420] }
 0x11e   : > { %1094 = vst [vmem:[#allocation1 + $0x10] ss:$2 sm:$0xff] %v1082_v4 }
 0x11f   : > { %1096 = vst [vmem:[#allocation1 + $0x11] ss:$2 sm:$0xff] %v1083_v5 }
 0x120   : > { %1277 = vmatmul.msk.f32.gmra.mxu0 %vm634_vm3, %v1008_v61  ;;  %v1097_v7 = vld.sshfl [vmem:[#allocation1] sm:$0xff pattern:$0x75316420] }
 0x121   : > { %1280 = vmatmul.msk.f32.vlgmr.msrb.gmra.mxu2 %vm375_vm0, %v1097_v7 }
 0x126   : > { %v1098_v11 = vld.sshfl [vmem:[#allocation1 + $0x10] sm:$0xff pattern:$0x75316420] }
 0x129   : > { %1281 = vmatmul.msk.f32.gmra.mxu2 %vm375_vm0, %v1098_v11 }
 0x14a   : > { %v656_v3 = vpop.f32.mrf.mxu0 }
 0x153   : > { %v659_v9 = vpop.f32.mrf.mxu0 }
 0x156   : > { %v696_v6 = vpop.f32.mrf.mxu1 }
 0x157   : > { %v697_v15 = vadd.f32 %v696_v6, %v656_v3 }
 0x15e   : > { %v699_v12 = vpop.f32.mrf.mxu1 }
 0x15f   : > { %v700_v21 = vadd.f32 %v699_v12, %v659_v9 }
 0x165   : > { %v742_v8 = vpop.f32.mrf.mxu2 }
 0x166   : > { %v748_v16 = vadd.f32 %v742_v8, %v697_v15 }
 0x16d   : > { %v745_v14 = vpop.f32.mrf.mxu2 }
 0x16e   : > { %v790_v10 = vpop.f32.mrf.mxu3  ;;  %v749_v24 = vadd.f32 %v745_v14, %v700_v21 }
 0x16f   : > { %v796_v17 = vadd.f32 %v790_v10, %v748_v16 }
 0x171   : > { %v838_v13 = vpop.f32.mrf.mxu0 }
 0x172   : > { %v844_v22 = vadd.f32 %v838_v13, %v796_v17 }
 0x176   : > { %v793_v18 = vpop.f32.mrf.mxu3 }
 0x177   : > { %v797_v26 = vadd.f32 %v793_v18, %v749_v24 }
 0x179   : > { %v841_v23 = vpop.f32.mrf.mxu0 }
 0x17a   : > { %v886_v19 = vpop.f32.mrf.mxu1  ;;  %v845_v32 = vadd.f32 %v841_v23, %v797_v26 }
 0x17b   : > { %v892_v25 = vadd.f32 %v886_v19, %v844_v22 }
 0x182   : > { %v889_v30 = vpop.f32.mrf.mxu1 }
 0x183   : > { %v893_v36 = vadd.f32 %v889_v30, %v845_v32 }
 0x189   : > { %v934_v20 = vpop.f32.mrf.mxu2 }
 0x18a   : > { %v940_v27 = vadd.f32 %v934_v20, %v892_v25 }
 0x191   : > { %v937_v34 = vpop.f32.mrf.mxu2 }
 0x192   : > { %v982_v28 = vpop.f32.mrf.mxu3  ;;  %v941_v38 = vadd.f32 %v937_v34, %v893_v36 }
 0x193   : > { %v988_v29 = vadd.f32 %v982_v28, %v940_v27 }
 0x195   : > { %v1030_v33 = vpop.f32.mrf.mxu0 }
 0x196   : > { %v1036_v35 = vadd.f32 %v1030_v33, %v988_v29 }
 0x198   : > { %v1042_v37 = vadd.f32 %v1337_v31, %v1036_v35 }
 0x19a   : > { %v1044_v39 = vmax.f32 %v1042_v37, 0.0  ;;  %v985_v40 = vpop.f32.mrf.mxu3 }
 0x19b   : > { %v989_v41 = vadd.f32 %v985_v40, %v941_v38 }
 0x19c   : > { %1278 = vmatmul.msk.f32.vlgmr.msrb.gmra.mxu1 %vm634_vm3, %v1044_v39 }
 0x19d   : > { %v1033_v42 = vpop.f32.mrf.mxu0 }
 0x19e   : > { %v1037_v43 = vadd.f32 %v1033_v42, %v989_v41 }
 0x1a0   : > { %v1043_v44 = vadd.f32 %v1337_v31, %v1037_v43 }
 0x1a2   : > { %v1045_v45 = vmax.f32 %v1043_v44, 0.0 }
 0x1a4   : > { %1279 = vmatmul.msk.f32.gmra.mxu1 %vm634_vm3, %v1045_v45  ;;  %v1120_v47 = vpop.f32.mrf.mxu2 }
 0x1ac   : > { %v1123_v55 = vpop.f32.mrf.mxu2 }
 0x219   : > { %v1074_v48 = vpop.f32.mrf.mxu1 }
 0x21a   : > { %v1075_v49 = vadd.f32 %v1338_v46, %v1074_v48 }
 0x21c   : > { %v1126_v51 = vadd.f32 %v1120_v47, %v1075_v49 }
 0x21e   : > { %v1132_v52 = vadd.f32 %v1339_v50, %v1126_v51 }
 0x220   : > { %v1134_v53 = vmax.f32 %v1132_v52, 0.0 }
 0x221   : > { %v1077_v54 = vpop.f32.mrf.mxu1 }
 0x222   : > { %v1138_v56 = vrot.slane %v1134_v53, 4  ;;  %1143 = vst.msk [vmem:[%s325_s25] sm:$0xf] %vm1142_vm4, %v1134_v53  ;;  %v1078_v57 = vadd.f32 %v1338_v46, %v1077_v54 }
 0x224   : > { %1144 = vst.msk [vmem:[%s325_s25 + $0x4] sm:$0xf] %vm1142_vm4, %v1138_v56  ;;  %v1127_v58 = vadd.f32 %v1123_v55, %v1078_v57 }
 0x226   : > { %v1133_v59 = vadd.f32 %v1339_v50, %v1127_v58 }
 0x228   : > { %v1135_v60 = vmax.f32 %v1133_v59, 0.0 }
 0x22a   : > { %v1139_v61 = vrot.slane %v1135_v60, 4  ;;  %1145 = vst.msk [vmem:[%s325_s25 + $0x8] sm:$0xf] %vm1142_vm4, %v1135_v60 }
 0x22c   : > { %1146 = vst.msk [vmem:[%s325_s25 + $0xc] sm:$0xf] %vm1142_vm4, %v1139_v61 }
 0x22d   : > { %1367 = shalt.err (!%p1364_p3)
}
 0x22e   : > { %s1405_s17 = smov 64   ;;  %s1406_s25 = smov 4  }
 0x22f   : > { %1291 = dma.vmem_to_hbm [thread:$0]  (%p1495_p5), %s1161_s28, 256, %s1163_s14, %s1148_s13, %s1405_s17, %s1405_s17, %s1406_s25  }
 0x230 PF: > { %p1297_p4 = scmp.ge.s32.totalorder %s1402_s12, 2  ;;  %s1177_s29 = sand.u32 1, %s1390_s30  }
 0x231   : > { %s1178_s22 = scalar_lea.sflag [#allocation4], %s1177_s29 }
 0x232   : > { %p1294_p7 = pnand %p1297_p4, %p1499_p6 }
 0x234   : > { %p1295_p8 = pneg %p1294_p7 }
 0x236   : > { %1385 = dma.done.wait (%p1295_p8), %s1178_s22, 256  }
 0x237   : > { %1387 = vsyncadd (%p1295_p8), %s1178_s22, 4294967040  ;;  %p19_p9 = scmp.ge.s32.totalorder %s1482_s15, 4   ;;  %s1707_s30 = smov %s1394_s10 }
 0x238   : > { %s1708_s10 = smov %s1398_s11  ;;  %s1709_s11 = smov %s1493_s18 }
 0x239   : > { %s1710_s12 = smov %s1482_s15  ;;  %21 = sbr.rel (!%p19_p9) target bundleno = 3 (0x3), region = 149 }
 0x23e   :  { %1184 = vsyncpa [#allocation4], 1 }
 0x23f   :  { %1186 = vsyncpa [#allocation4 + $0x1], 1 }

</bundles_post_ra>
